<compile_context>
chip_gen: v5e
topology: v5e:2x2
jax: 0.10.0
libtpu: 0.0.40
codegen_flags: <defaults>
</compile_context>

<pallas_src>
import functools
from typing import NamedTuple

import jax
import jax.numpy as jnp
from jax import lax
from jax.experimental import pallas as pl
from jax.experimental.pallas import tpu as pltpu


def _round_up(x: int, m: int) -> int:
    return ((x + m - 1) // m) * m


def _cdiv(a: int, b: int) -> int:
    return (a + b - 1) // b


_UNROLL_MAX_HIDDEN = 8  # fully unroll the hidden-layer loop up to this depth


class MLPConfig(NamedTuple):
    input_dim: int
    hidden_dim: int
    num_hidden: int
    output_dim: int
    compute_dtype: type  # e.g. jnp.bfloat16 (hashable -> usable as static arg)


# ---------------------------------------------------------------------------
# Fused MLP kernel: input layer -> hidden layers -> head + sigmoid epilogue.
# ---------------------------------------------------------------------------
def _fused_mlp_kernel(x_ref, w_in_ref, b_in_ref, w_hid_ref, b_hid_ref,
                      w_head_ref, b_head_ref, o_ref, h_ref, *, num_hidden):
    compute_dtype = h_ref.dtype

    # Input layer: cast the loaded f32 tile to bf16 in-kernel (no HBM copy of
    # x), matmul with f32 accumulation, add f32 bias.
    x = x_ref[...].astype(compute_dtype)
    acc = jnp.dot(x, w_in_ref[...], preferred_element_type=jnp.float32)
    h_ref[0] = (acc + b_in_ref[...]).astype(compute_dtype)

    def layer(l, src_slot, dst_slot):
        a = jnp.dot(h_ref[src_slot], w_hid_ref[l],
                    preferred_element_type=jnp.float32)
        h_ref[dst_slot] = (a + b_hid_ref[l]).astype(compute_dtype)

    if num_hidden <= _UNROLL_MAX_HIDDEN:
        # Small stacks: fully unrolled, static ping-pong slots (LLO-visible).
        for l in range(num_hidden):
            layer(l, l % 2, (l + 1) % 2)
    else:
        # Deep stacks: fori_loop, two layers per iteration so the ping-pong
        # slots are static; only the layer index into w_hid/b_hid is dynamic.
        def body(p, carry):
            l0 = 2 * p
            layer(l0, 0, 1)
            layer(l0 + 1, 1, 0)
            return carry

        lax.fori_loop(0, num_hidden // 2, body, 0)
        if num_hidden % 2 == 1:
            layer(num_hidden - 1, 0, 1)

    # Head + fused (exact) sigmoid epilogue.
    final = h_ref[num_hidden % 2]
    logits = jnp.dot(final, w_head_ref[...], preferred_element_type=jnp.float32)
    logits = logits + b_head_ref[...]
    o_ref[...] = (1.0 / (1.0 + jnp.exp(-logits))).astype(o_ref.dtype)


# ---------------------------------------------------------------------------
# Parameter prep (done ONCE): transpose, pad, cast, stack hidden layers.
# ---------------------------------------------------------------------------
def init_linear_params(key, in_dim, out_dim, dtype=jnp.float32):
    """PyTorch-style nn.Linear init: W (out, in), b (out,), U(+-1/sqrt(in))."""
    kw, kb = jax.random.split(key)
    bound = 1.0 / (in_dim ** 0.5)
    w = jax.random.uniform(kw, (out_dim, in_dim), dtype, -bound, bound)
    b = jax.random.uniform(kb, (out_dim,), dtype, -bound, bound)
    return w, b


def prepare_params(params, compute_dtype=jnp.bfloat16):
    """Transpose weights to (in, out), zero-pad output-feature dims to
    multiples of 128, cast weights to the matmul dtype (biases stay f32), and
    stack the hidden layers into one (L, H_p, H_p) tensor.  The input layer's
    K dim keeps its true size (x is fed unpadded); all zero padding is exact:
    padded columns contribute 0 and stay 0 through the network."""
    (w_in, b_in), hidden, (w_head, b_head) = params
    hidden_dim, input_dim = w_in.shape
    output_dim = w_head.shape[0]
    h_p = _round_up(hidden_dim, 128)
    out_p = _round_up(output_dim, 128)

    def pad2(a, rows, cols):
        return jnp.pad(a, ((0, rows - a.shape[0]), (0, cols - a.shape[1])))

    w_in_p = pad2(w_in.T.astype(compute_dtype), input_dim, h_p)
    b_in_p = pad2(b_in.astype(jnp.float32).reshape(1, -1), 1, h_p)

    num_hidden = len(hidden)
    if num_hidden > 0:
        w_hid_p = jnp.stack(
            [pad2(w.T.astype(compute_dtype), h_p, h_p) for w, _ in hidden])
        b_hid_p = jnp.stack(
            [pad2(b.astype(jnp.float32).reshape(1, -1), 1, h_p) for _, b in hidden])
    else:
        # Minimal dummies (never read: the hidden loop has zero iterations).
        w_hid_p = jnp.zeros((1, 8, 128), compute_dtype)
        b_hid_p = jnp.zeros((1, 1, 128), jnp.float32)

    w_head_p = pad2(w_head.T.astype(compute_dtype), h_p, out_p)
    b_head_p = pad2(b_head.astype(jnp.float32).reshape(1, -1), 1, out_p)

    cfg = MLPConfig(input_dim, hidden_dim, num_hidden, output_dim, compute_dtype)
    return (w_in_p, b_in_p, w_hid_p, b_hid_p, w_head_p, b_head_p), cfg


def _vmem_limit_bytes() -> int:
    """Generation-aware scoped-VMEM limit with ~20% headroom for Pallas's own
    I/O buffers / internal scratch (~51 MiB on v7x, ~102 MiB on v5e/v6e)."""
    try:
        cap = pltpu.get_tpu_info().vmem_capacity_bytes
    except Exception:
        cap = 64 * 2 ** 20  # conservative fallback, valid on every generation
    return int(cap * 0.8)


# ---------------------------------------------------------------------------
# Jitted forward: one fused pallas_call over a ragged batch grid.
# ---------------------------------------------------------------------------
@functools.partial(jax.jit, static_argnums=(2,))
def classifier_forward(padded_params, x, cfg: MLPConfig):
    w_in, b_in, w_hid, b_hid, w_head, b_head = padded_params
    compute_dtype = cfg.compute_dtype
    out_dtype = x.dtype

    B, in_dim = x.shape
    h_p = w_in.shape[1]
    out_p = w_head.shape[1]

    # Batch tiling: fewest tiles that keep a tile <= max_tile rows, but at
    # least 2 tiles when the batch allows it (so v7x can split the "parallel"
    # axis across its two TensorCores).  16-row alignment for bf16 packing;
    # tiny batches use one full-batch block (always layout-legal).
    max_tile = 1024 if h_p <= 512 else 512
    n_target = max(_cdiv(B, max_tile), 2 if B >= 32 else 1)
    if n_target == 1:
        tile_b = B
    else:
        tile_b = _round_up(_cdiv(B, n_target), 16)
    num_tiles = _cdiv(B, tile_b)

    # Constant-index (VMEM-resident) operands: single pipeline buffer.
    resident = pl.Buffered(1)

    def const_spec(a):
        zeros = (0,) * a.ndim
        return pl.BlockSpec(a.shape, lambda i, z=zeros: z, pipeline_mode=resident)

    # x tile spec; deepen the pipeline for very short per-tile compute.
    if h_p <= 128 and num_tiles >= 3:
        x_spec = pl.BlockSpec((tile_b, in_dim), lambda i: (i, 0),
                              pipeline_mode=pl.Buffered(3))
    else:
        x_spec = pl.BlockSpec((tile_b, in_dim), lambda i: (i, 0))

    # TODO(synk): if the single-buffered weight stack ever exceeds the VMEM
    # budget (very large hidden_dim * num_hidden), stream w_hid/b_hid one layer
    # at a time (memory_space=pl.ANY + a 2-slot make_async_copy pipeline over
    # the layer loop) instead of keeping the whole stack resident.

    kernel = functools.partial(_fused_mlp_kernel, num_hidden=cfg.num_hidden)

    out = pl.pallas_call(
        kernel,
        out_shape=jax.ShapeDtypeStruct((B, out_p), out_dtype),
        grid_spec=pltpu.PrefetchScalarGridSpec(
            num_scalar_prefetch=0,
            grid=(num_tiles,),
            in_specs=[
                x_spec,                 # batch tile of x (ragged last tile)
                const_spec(w_in), const_spec(b_in),
                const_spec(w_hid), const_spec(b_hid),
                const_spec(w_head), const_spec(b_head),
            ],
            out_specs=pl.BlockSpec((tile_b, out_p), lambda i: (i, 0)),
            scratch_shapes=[
                pltpu.VMEM((2, tile_b, h_p), compute_dtype),  # activation ping-pong
            ],
        ),
        compiler_params=pltpu.CompilerParams(
            dimension_semantics=("parallel",),   # v7x: batch tiles across 2 TCs
            vmem_limit_bytes=_vmem_limit_bytes(),
        ),
    )(x, w_in, b_in, w_hid, b_hid, w_head, b_head)

    if out_p != cfg.output_dim:
        out = out[:, :cfg.output_dim]
    return out


# ---------------------------------------------------------------------------
# Pure-JAX reference (f32) for correctness checking.
# ---------------------------------------------------------------------------
def classifier_ref(params, x):
    (w_in, b_in), hidden, (w_head, b_head) = params
    h = x @ w_in.T + b_in
    for w, b in hidden:
        h = h @ w.T + b
    logits = h @ w_head.T + b_head
    return jax.nn.sigmoid(logits)


def _build_params(key, input_dim, hidden_dim, hidden_layers, output_dim):
    keys = jax.random.split(key, hidden_layers + 2)
    in_params = init_linear_params(keys[0], input_dim, hidden_dim)
    hid_params = [init_linear_params(keys[1 + i], hidden_dim, hidden_dim)
                  for i in range(hidden_layers)]
    head_params = init_linear_params(keys[1 + hidden_layers], hidden_dim, output_dim)
    return (in_params, hid_params, head_params)


def _run_case(key, batch, input_dim, hidden_dim, hidden_layers, output_dim, tol):
    kp, kx = jax.random.split(key)
    params = _build_params(kp, input_dim, hidden_dim, hidden_layers, output_dim)
    x = jax.random.normal(kx, (batch, input_dim), jnp.float32)

    padded_params, cfg = prepare_params(params, compute_dtype=jnp.bfloat16)
    out = jax.block_until_ready(classifier_forward(padded_params, x, cfg))

    ref = classifier_ref(params, x)
    assert out.shape == (batch, output_dim), out.shape
    # bf16 matmul operands (f32 accumulate) vs pure-f32 reference on sigmoid
    # outputs: well within 3e-2.
    err = float(jnp.max(jnp.abs(out - ref)))
    assert jnp.allclose(out, ref, atol=tol, rtol=0.0), err
    return out


if __name__ == "__main__":
    root = jax.random.PRNGKey(0)
    k1, k2, k3 = jax.random.split(root, 3)

    # Small shapes consistent with the module's constructor.
    _run_case(k1, batch=2, input_dim=16, hidden_dim=32, hidden_layers=2,
              output_dim=8, tol=3e-2)
    # Multi-tile ragged batch grid (2 tiles, partial last tile), zero hidden layers.
    _run_case(k2, batch=100, input_dim=16, hidden_dim=32, hidden_layers=0,
              output_dim=8, tol=3e-2)
    # Deep stack -> fori_loop path (odd layer count exercises the tail layer).
    _run_case(k3, batch=37, input_dim=16, hidden_dim=32, hidden_layers=9,
              output_dim=8, tol=3e-2)

    print("KERNEL_OK")
</pallas_src>

<mosaic_0001>
module attributes {stable_mosaic.version = 11 : i64} {
  func.func @_fused_mlp_kernel(%arg0: i32, %arg1: memref<2x16xf32, #tpu.memory_space<vmem>>, %arg2: memref<16x128xbf16, #tpu.memory_space<vmem>>, %arg3: memref<1x128xf32, #tpu.memory_space<vmem>>, %arg4: memref<2x128x128xbf16, #tpu.memory_space<vmem>>, %arg5: memref<2x1x128xf32, #tpu.memory_space<vmem>>, %arg6: memref<128x128xbf16, #tpu.memory_space<vmem>>, %arg7: memref<1x128xf32, #tpu.memory_space<vmem>>, %arg8: memref<2x128xf32, #tpu.memory_space<vmem>>, %arg9: memref<2x2x128xbf16, #tpu.memory_space<vmem>>) attributes {dimension_semantics = [#tpu.dimension_semantics<parallel>], iteration_bounds = array<i64: 1>, scalar_prefetch = 0 : i64, scratch_operands = 1 : i64, tpu.core_type = #tpu.core_type<tc>, window_params = [{transform_indices = @transform_0, window_bounds = array<i64: 2, 16>}, {pipeline_mode = #tpu.pipeline_mode<synchronous>, transform_indices = @transform_1, window_bounds = array<i64: 16, 128>}, {pipeline_mode = #tpu.pipeline_mode<synchronous>, transform_indices = @transform_2, window_bounds = array<i64: 1, 128>}, {pipeline_mode = #tpu.pipeline_mode<synchronous>, transform_indices = @transform_3, window_bounds = array<i64: 2, 128, 128>}, {pipeline_mode = #tpu.pipeline_mode<synchronous>, transform_indices = @transform_4, window_bounds = array<i64: 2, 1, 128>}, {pipeline_mode = #tpu.pipeline_mode<synchronous>, transform_indices = @transform_5, window_bounds = array<i64: 128, 128>}, {pipeline_mode = #tpu.pipeline_mode<synchronous>, transform_indices = @transform_6, window_bounds = array<i64: 1, 128>}, {transform_indices = @transform_7, window_bounds = array<i64: 2, 128>}]} {
    %c0 = arith.constant 0 : index
    %c0_0 = arith.constant 0 : index
    %0 = vector.load %arg1[%c0, %c0_0] : memref<2x16xf32, #tpu.memory_space<vmem>>, vector<2x16xf32>
    %1 = arith.truncf %0 : vector<2x16xf32> to vector<2x16xbf16>
    %c0_1 = arith.constant 0 : index
    %c0_2 = arith.constant 0 : index
    %2 = vector.load %arg2[%c0_1, %c0_2] : memref<16x128xbf16, #tpu.memory_space<vmem>>, vector<16x128xbf16>
    %cst = arith.constant dense<0.000000e+00> : vector<2x128xf32>
    %3 = tpu.matmul %1, %2, %cst {dimension_numbers = #tpu.dot_dimension_numbers<[1], [0], [0], [1], [0, 0, 1, 1], [], []>} : vector<2x16xbf16>, vector<16x128xbf16>, vector<2x128xf32> -> vector<2x128xf32>
    %c0_3 = arith.constant 0 : index
    %c0_4 = arith.constant 0 : index
    %4 = vector.load %arg3[%c0_3, %c0_4] : memref<1x128xf32, #tpu.memory_space<vmem>>, vector<1x128xf32>
    %5 = vector.broadcast %4 : vector<1x128xf32> to vector<2x128xf32>
    %6 = arith.addf %3, %5 : vector<2x128xf32>
    %7 = arith.truncf %6 : vector<2x128xf32> to vector<2x128xbf16>
    %c0_5 = arith.constant 0 : index
    %c0_6 = arith.constant 0 : index
    %c0_7 = arith.constant 0 : index
    %8 = vector.load %arg9[%c0_5, %c0_6, %c0_7] : memref<2x2x128xbf16, #tpu.memory_space<vmem>>, vector<1x2x128xbf16>
    %9 = vector.shape_cast %8 : vector<1x2x128xbf16> to vector<2x128xbf16>
    %10 = vector.shape_cast %7 : vector<2x128xbf16> to vector<1x2x128xbf16>
    tpu.vector_store %arg9[%c0_5, %c0_6, %c0_7], %10 {strides = array<i32>} : memref<2x2x128xbf16, #tpu.memory_space<vmem>>, vector<1x2x128xbf16>,
    %c0_8 = arith.constant 0 : index
    %c0_9 = arith.constant 0 : index
    %c0_10 = arith.constant 0 : index
    %11 = vector.load %arg9[%c0_8, %c0_9, %c0_10] : memref<2x2x128xbf16, #tpu.memory_space<vmem>>, vector<1x2x128xbf16>
    %12 = vector.shape_cast %11 : vector<1x2x128xbf16> to vector<2x128xbf16>
    %c0_11 = arith.constant 0 : index
    %c0_12 = arith.constant 0 : index
    %c0_13 = arith.constant 0 : index
    %13 = vector.load %arg4[%c0_11, %c0_12, %c0_13] : memref<2x128x128xbf16, #tpu.memory_space<vmem>>, vector<1x128x128xbf16>
    %14 = vector.shape_cast %13 : vector<1x128x128xbf16> to vector<128x128xbf16>
    %cst_14 = arith.constant dense<0.000000e+00> : vector<2x128xf32>
    %15 = tpu.matmul %12, %14, %cst_14 {dimension_numbers = #tpu.dot_dimension_numbers<[1], [0], [0], [1], [0, 0, 1, 1], [], []>} : vector<2x128xbf16>, vector<128x128xbf16>, vector<2x128xf32> -> vector<2x128xf32>
    %c0_15 = arith.constant 0 : index
    %c0_16 = arith.constant 0 : index
    %c0_17 = arith.constant 0 : index
    %16 = vector.load %arg5[%c0_15, %c0_16, %c0_17] : memref<2x1x128xf32, #tpu.memory_space<vmem>>, vector<1x1x128xf32>
    %17 = vector.shape_cast %16 : vector<1x1x128xf32> to vector<1x128xf32>
    %18 = vector.broadcast %17 : vector<1x128xf32> to vector<2x128xf32>
    %19 = arith.addf %15, %18 : vector<2x128xf32>
    %20 = arith.truncf %19 : vector<2x128xf32> to vector<2x128xbf16>
    %c1 = arith.constant 1 : index
    %c0_18 = arith.constant 0 : index
    %c0_19 = arith.constant 0 : index
    %21 = vector.load %arg9[%c1, %c0_18, %c0_19] : memref<2x2x128xbf16, #tpu.memory_space<vmem>>, vector<1x2x128xbf16>
    %22 = vector.shape_cast %21 : vector<1x2x128xbf16> to vector<2x128xbf16>
    %23 = vector.shape_cast %20 : vector<2x128xbf16> to vector<1x2x128xbf16>
    tpu.vector_store %arg9[%c1, %c0_18, %c0_19], %23 {strides = array<i32>} : memref<2x2x128xbf16, #tpu.memory_space<vmem>>, vector<1x2x128xbf16>,
    %c1_20 = arith.constant 1 : index
    %c0_21 = arith.constant 0 : index
    %c0_22 = arith.constant 0 : index
    %24 = vector.load %arg9[%c1_20, %c0_21, %c0_22] : memref<2x2x128xbf16, #tpu.memory_space<vmem>>, vector<1x2x128xbf16>
    %25 = vector.shape_cast %24 : vector<1x2x128xbf16> to vector<2x128xbf16>
    %c1_23 = arith.constant 1 : index
    %c0_24 = arith.constant 0 : index
    %c0_25 = arith.constant 0 : index
    %26 = vector.load %arg4[%c1_23, %c0_24, %c0_25] : memref<2x128x128xbf16, #tpu.memory_space<vmem>>, vector<1x128x128xbf16>
    %27 = vector.shape_cast %26 : vector<1x128x128xbf16> to vector<128x128xbf16>
    %cst_26 = arith.constant dense<0.000000e+00> : vector<2x128xf32>
    %28 = tpu.matmul %25, %27, %cst_26 {dimension_numbers = #tpu.dot_dimension_numbers<[1], [0], [0], [1], [0, 0, 1, 1], [], []>} : vector<2x128xbf16>, vector<128x128xbf16>, vector<2x128xf32> -> vector<2x128xf32>
    %c1_27 = arith.constant 1 : index
    %c0_28 = arith.constant 0 : index
    %c0_29 = arith.constant 0 : index
    %29 = vector.load %arg5[%c1_27, %c0_28, %c0_29] : memref<2x1x128xf32, #tpu.memory_space<vmem>>, vector<1x1x128xf32>
    %30 = vector.shape_cast %29 : vector<1x1x128xf32> to vector<1x128xf32>
    %31 = vector.broadcast %30 : vector<1x128xf32> to vector<2x128xf32>
    %32 = arith.addf %28, %31 : vector<2x128xf32>
    %33 = arith.truncf %32 : vector<2x128xf32> to vector<2x128xbf16>
    %c0_30 = arith.constant 0 : index
    %c0_31 = arith.constant 0 : index
    %c0_32 = arith.constant 0 : index
    %34 = vector.load %arg9[%c0_30, %c0_31, %c0_32] : memref<2x2x128xbf16, #tpu.memory_space<vmem>>, vector<1x2x128xbf16>
    %35 = vector.shape_cast %34 : vector<1x2x128xbf16> to vector<2x128xbf16>
    %36 = vector.shape_cast %33 : vector<2x128xbf16> to vector<1x2x128xbf16>
    tpu.vector_store %arg9[%c0_30, %c0_31, %c0_32], %36 {strides = array<i32>} : memref<2x2x128xbf16, #tpu.memory_space<vmem>>, vector<1x2x128xbf16>,
    %c0_33 = arith.constant 0 : index
    %c0_34 = arith.constant 0 : index
    %c0_35 = arith.constant 0 : index
    %37 = vector.load %arg9[%c0_33, %c0_34, %c0_35] : memref<2x2x128xbf16, #tpu.memory_space<vmem>>, vector<1x2x128xbf16>
    %38 = vector.shape_cast %37 : vector<1x2x128xbf16> to vector<2x128xbf16>
    %c0_36 = arith.constant 0 : index
    %c0_37 = arith.constant 0 : index
    %39 = vector.load %arg6[%c0_36, %c0_37] : memref<128x128xbf16, #tpu.memory_space<vmem>>, vector<128x128xbf16>
    %cst_38 = arith.constant dense<0.000000e+00> : vector<2x128xf32>
    %40 = tpu.matmul %38, %39, %cst_38 {dimension_numbers = #tpu.dot_dimension_numbers<[1], [0], [0], [1], [0, 0, 1, 1], [], []>} : vector<2x128xbf16>, vector<128x128xbf16>, vector<2x128xf32> -> vector<2x128xf32>
    %c0_39 = arith.constant 0 : index
    %c0_40 = arith.constant 0 : index
    %41 = vector.load %arg7[%c0_39, %c0_40] : memref<1x128xf32, #tpu.memory_space<vmem>>, vector<1x128xf32>
    %42 = vector.broadcast %41 : vector<1x128xf32> to vector<2x128xf32>
    %43 = arith.addf %40, %42 : vector<2x128xf32>
    %cst_41 = arith.constant 0.000000e+00 : f32
    %44 = vector.broadcast %cst_41 : f32 to vector<2x128xf32>
    %45 = arith.subf %44, %43 : vector<2x128xf32>
    %46 = math.exp %45 : vector<2x128xf32>
    %cst_42 = arith.constant 1.000000e+00 : f32
    %47 = vector.broadcast %cst_42 : f32 to vector<2x128xf32>
    %48 = arith.addf %47, %46 : vector<2x128xf32>
    %cst_43 = arith.constant 1.000000e+00 : f32
    %49 = vector.broadcast %cst_43 : f32 to vector<2x128xf32>
    %50 = arith.divf %49, %48 : vector<2x128xf32>
    %c0_44 = arith.constant 0 : index
    %c0_45 = arith.constant 0 : index
    %51 = vector.load %arg8[%c0_44, %c0_45] : memref<2x128xf32, #tpu.memory_space<vmem>>, vector<2x128xf32>
    tpu.vector_store %arg8[%c0_44, %c0_45], %50 {strides = array<i32>} : memref<2x128xf32, #tpu.memory_space<vmem>>, vector<2x128xf32>,
    return
  }
  func.func @transform_0(%arg0: i32) -> (i32, i32) {
    %c0_i32 = arith.constant 0 : i32
    %c0_i32_0 = arith.constant 0 : i32
    return %arg0, %c0_i32 : i32, i32
  }
  func.func @transform_1(%arg0: i32) -> (i32, i32) {
    %c0_i32 = arith.constant 0 : i32
    %c0_i32_0 = arith.constant 0 : i32
    %c0_i32_1 = arith.constant 0 : i32
    return %c0_i32, %c0_i32_0 : i32, i32
  }
  func.func @transform_2(%arg0: i32) -> (i32, i32) {
    %c0_i32 = arith.constant 0 : i32
    %c0_i32_0 = arith.constant 0 : i32
    %c0_i32_1 = arith.constant 0 : i32
    return %c0_i32, %c0_i32_0 : i32, i32
  }
  func.func @transform_3(%arg0: i32) -> (i32, i32, i32) {
    %c0_i32 = arith.constant 0 : i32
    %c0_i32_0 = arith.constant 0 : i32
    %c0_i32_1 = arith.constant 0 : i32
    %c0_i32_2 = arith.constant 0 : i32
    return %c0_i32, %c0_i32_0, %c0_i32_1 : i32, i32, i32
  }
  func.func @transform_4(%arg0: i32) -> (i32, i32, i32) {
    %c0_i32 = arith.constant 0 : i32
    %c0_i32_0 = arith.constant 0 : i32
    %c0_i32_1 = arith.constant 0 : i32
    %c0_i32_2 = arith.constant 0 : i32
    return %c0_i32, %c0_i32_0, %c0_i32_1 : i32, i32, i32
  }
  func.func @transform_5(%arg0: i32) -> (i32, i32) {
    %c0_i32 = arith.constant 0 : i32
    %c0_i32_0 = arith.constant 0 : i32
    %c0_i32_1 = arith.constant 0 : i32
    return %c0_i32, %c0_i32_0 : i32, i32
  }
  func.func @transform_6(%arg0: i32) -> (i32, i32) {
    %c0_i32 = arith.constant 0 : i32
    %c0_i32_0 = arith.constant 0 : i32
    %c0_i32_1 = arith.constant 0 : i32
    return %c0_i32, %c0_i32_0 : i32, i32
  }
  func.func @transform_7(%arg0: i32) -> (i32, i32) {
    %c0_i32 = arith.constant 0 : i32
    %c0_i32_0 = arith.constant 0 : i32
    return %arg0, %c0_i32 : i32, i32
  }
}

</mosaic_0001>

<bundles_post_ra>
// kernel: classifier_forward.1
= control target key start
LH: loop header
LB: loop body
LE: loop exit
PB: predicated region body
PF: predicated region fallthrough
CT: control target
= control target key end

     0   :  { %12 = vsyncpa [#allocation4], 0  ;;  %s799_s0 = inlined_call_operand.vmem [shape: f32[2,16], index: 0, kind: input, shape index: {}]   ;;  %s800_s1 = inlined_call_operand.hbm [shape: bf16[16,128], index: 1, kind: input, shape index: {}]   ;;  %s801_s2 = inlined_call_operand.hbm [shape: f32[1,128], index: 2, kind: input, shape index: {}]   ;;  %s802_s3 = inlined_call_operand.hbm [shape: bf16[2,128,128], index: 3, kind: input, shape index: {}]   ;;  %s803_s4 = inlined_call_operand.hbm [shape: f32[2,1,128], index: 4, kind: input, shape index: {}]   ;;  %s804_s5 = inlined_call_operand.hbm [shape: bf16[128,128], index: 5, kind: input, shape index: {}]   ;;  %s805_s6 = inlined_call_operand.vmem [shape: f32[1,128], index: 6, kind: input, shape index: {}]   ;;  %s806_s7 = inlined_call_operand.hbm [shape: f32[2,128], index: 7, kind: output, shape index: {}]  }
   0x1   :  { %13 = vsyncpa [#allocation7], 0 }
   0x2   :  { %14 = vsyncpa [#allocation10], 0  ;;  %s36_s26 = sshll.u32 %s801_s2, 4  ;;  %s37_s26 = int_to_ptr.hbm [resolvable:$true] %s36_s26 }
   0x3   :  { %15 = vsyncpa [#allocation5], 0  ;;  %s725_s27 = smov [#allocation6]   ;;  %s59_s8 = sshll.u32 %s803_s4, 4  ;;  %s60_s8 = int_to_ptr.hbm [resolvable:$true] %s59_s8 }
   0x4   :  { %s38_s28 = sshll.u32 %s725_s27, 4  ;;  %s726_s9 = smov [#allocation9]   ;;  %s39_s28 = int_to_ptr.vmem [resolvable:$true] %s38_s28 }
   0x5   :  { %41 = dma.hbm_to_vmem [thread:$0]  %s37_s26, 16, %s39_s28, [#allocation7]  }
   0x6   :  { %s61_s10 = sshll.u32 %s726_s9, 4  ;;  %s727_s11 = smov 16   ;;  %s62_s10 = int_to_ptr.vmem [resolvable:$true] %s61_s10 }
   0x7   :  { %s728_s12 = smov 1   ;;  %s22_s2 = sshll.u32 %s800_s1, 4  ;;  %s23_s2 = int_to_ptr.hbm [resolvable:$true] %s22_s2 }
   0x8   :  { %67 = dma.hbm_to_vmem [thread:$0]  %s60_s8, 32, %s62_s10, [#allocation10], %s727_s11, %s727_s11, %s728_s12  }
   0x9   :  { %s729_s15 = smov [#allocation3]   ;;  %s46_s4 = sshll.u32 %s802_s3, 4  ;;  %s47_s4 = int_to_ptr.hbm [resolvable:$true] %s46_s4 }
   0xa   :  { %s24_s16 = sshll.u32 %s729_s15, 4  ;;  %s730_s19 = smov 64   ;;  %s25_s16 = int_to_ptr.vmem [resolvable:$true] %s24_s16 }
   0xb   :  { %s731_s20 = smov 4   ;;  %s732_s21 = smov [#allocation8]  }
   0xc   :  { %30 = dma.hbm_to_vmem [thread:$0]  %s23_s2, 128, %s25_s16, [#allocation4], %s730_s19, %s730_s19, %s731_s20  }
   0xd   :  { %s48_s22 = sshll.u32 %s732_s21, 4  ;;  %s72_s25 = sshll.u32 %s804_s5, 4  ;;  %s49_s22 = int_to_ptr.vmem [resolvable:$true] %s48_s22  ;;  %s73_s25 = int_to_ptr.hbm [resolvable:$true] %s72_s25 }
   0xe   :  { %54 = dma.hbm_to_vmem [thread:$0]  %s47_s4, 2048, %s49_s22, [#allocation7], %s730_s19, %s730_s19, %s731_s20  }
   0xf   :  { %s733_s1 = smov [#allocation11]  }
  0x10   :  { %s74_s26 = sshll.u32 %s733_s1, 4  ;;  %s75_s26 = int_to_ptr.vmem [resolvable:$true] %s74_s26 }
  0x11   :  { %80 = dma.hbm_to_vmem [thread:$0]  %s73_s25, 1024, %s75_s26, [#allocation10], %s730_s19, %s730_s19, %s731_s20  }
  0x12   :  { %717 = dma.done.wait [#allocation4], 128  }
  0x13   :  { %718 = vsyncadd [#allocation4], 4294967168 }
  0x14   :  { %719 = dma.done.wait [#allocation7], 2064  }
  0x15   :  { %720 = vsyncadd [#allocation7], 4294965232 }
  0x16   :  { %721 = dma.done.wait [#allocation10], 1056  }
  0x17   :  { %722 = vsyncadd [#allocation10], 4294966240  ;;  %v530_v0 = vld [vmem:[#allocation3] sm:$0xff]  ;;  %v104_v1 = vld [vmem:[%s799_s0] sm:$0x3]  ;;  %vm118_vm0 = vcmask 130048  }
  0x18   :  { %v538_v2 = vld [vmem:[#allocation8 + $0x38] sm:$0xff]  ;;  %v105_v3 = vpack.c.bf16 %v104_v1, %v104_v1  ;;  %129 = vmatpush.bf16.msra.mxu0 %v530_v0  ;;  %v537_v4 = vld [vmem:[#allocation8 + $0x30] sm:$0xff]  ;;  %v536_v5 = vld [vmem:[#allocation8 + $0x28] sm:$0xff]  ;;  %s734_s28 = smov [#allocation12]   ;;  %s417_s8 = sshll.u32 %s806_s7, 4  ;;  %s418_s8 = int_to_ptr.hbm [resolvable:$true] %s417_s8 }
  0x19   :  { %206 = vmatpush.bf16.msra.mxu1 %v538_v2  ;;  %v535_v6 = vld [vmem:[#allocation8 + $0x20] sm:$0xff]  ;;  %v534_v7 = vld [vmem:[#allocation8 + $0x18] sm:$0xff]  ;;  %v533_v8 = vld [vmem:[#allocation8 + $0x10] sm:$0xff]  ;;  %s415_s29 = sshll.u32 %s734_s28, 4  ;;  %s416_s29 = int_to_ptr.vmem [resolvable:$true] %s415_s29 }
  0x1a   :  { %v532_v9 = vld [vmem:[#allocation8 + $0x8] sm:$0xff]  ;;  %v531_v10 = vld [vmem:[#allocation8] sm:$0xff]  ;;  %v546_v11 = vld [vmem:[#allocation8 + $0x78] sm:$0xff] }
  0x1b   :  { %433 = vmatmul.msk.bf16.vlgmr.msra.gmra.mxu0 %vm118_vm0, %v105_v3  ;;  %293 = vmatpush.bf16.msra.mxu2 %v546_v11  ;;  %v545_v12 = vld [vmem:[#allocation8 + $0x70] sm:$0xff]  ;;  %v544_v13 = vld [vmem:[#allocation8 + $0x68] sm:$0xff]  ;;  %v543_v14 = vld [vmem:[#allocation8 + $0x60] sm:$0xff] }
  0x1c   :  { %v542_v15 = vld [vmem:[#allocation8 + $0x58] sm:$0xff]  ;;  %v541_v22 = vld [vmem:[#allocation8 + $0x50] sm:$0xff]  ;;  %v540_v23 = vld [vmem:[#allocation8 + $0x48] sm:$0xff] }
  0x1d   :  { %207 = vmatpush.bf16.msra.mxu1 %v537_v4  ;;  %v565_v16 = vld [vmem:[#allocation6] ss:$0 sm:$0xff]  ;;  %v539_v24 = vld [vmem:[#allocation8 + $0x40] sm:$0xff]  ;;  %v553_v26 = vld [vmem:[#allocation11 + $0x30] sm:$0xff] }
  0x1e   :  { %v554_v25 = vld [vmem:[#allocation11 + $0x38] sm:$0xff]  ;;  %v552_v27 = vld [vmem:[#allocation11 + $0x28] sm:$0xff]  ;;  %v551_v28 = vld [vmem:[#allocation11 + $0x20] sm:$0xff] }
  0x1f   :  { %294 = vmatpush.bf16.msra.mxu2 %v545_v12  ;;  %377 = vmatpush.bf16.msra.mxu3 %v554_v25  ;;  %v550_v29 = vld [vmem:[#allocation11 + $0x18] sm:$0xff]  ;;  %v549_v36 = vld [vmem:[#allocation11 + $0x10] sm:$0xff]  ;;  %v548_v37 = vld [vmem:[#allocation11 + $0x8] sm:$0xff] }
  0x20   :  { %v566_v30 = vld [vmem:[#allocation9] ss:$0 sm:$0xff]  ;;  %v547_v38 = vld [vmem:[#allocation11] sm:$0xff]  ;;  %v567_v39 = vld [vmem:[#allocation9 + $0x1] ss:$0 sm:$0xff] }
  0x21   :  { %208 = vmatpush.bf16.msra.mxu1 %v536_v5  ;;  %v568_v45 = vld [vmem:[%s805_s6] ss:$0 sm:$0xff] }
  0x23   :  { %295 = vmatpush.bf16.msra.mxu2 %v544_v13  ;;  %378 = vmatpush.bf16.msra.mxu3 %v553_v26 }
  0x25   :  { %209 = vmatpush.bf16.msra.mxu1 %v535_v6 }
  0x27   :  { %296 = vmatpush.bf16.msra.mxu2 %v543_v14  ;;  %379 = vmatpush.bf16.msra.mxu3 %v552_v27 }
  0x29   :  { %210 = vmatpush.bf16.msra.mxu1 %v534_v7 }
  0x2b   :  { %297 = vmatpush.bf16.msra.mxu2 %v542_v15  ;;  %380 = vmatpush.bf16.msra.mxu3 %v551_v28 }
  0x2d   :  { %211 = vmatpush.bf16.msra.mxu1 %v533_v8 }
  0x2f   :  { %298 = vmatpush.bf16.msra.mxu2 %v541_v22  ;;  %381 = vmatpush.bf16.msra.mxu3 %v550_v29 }
  0x31   :  { %212 = vmatpush.bf16.msra.mxu1 %v532_v9 }
  0x33   :  { %299 = vmatpush.bf16.msra.mxu2 %v540_v23  ;;  %382 = vmatpush.bf16.msra.mxu3 %v549_v36 }
  0x35   :  { %213 = vmatpush.bf16.msra.mxu1 %v531_v10 }
  0x37   :  { %300 = vmatpush.bf16.msra.mxu2 %v539_v24  ;;  %383 = vmatpush.bf16.msra.mxu3 %v548_v37 }
  0x3b   :  { %384 = vmatpush.bf16.msra.mxu3 %v547_v38 }
  0x98   :  { %v131_v17 = vpop.f32.mrf.mxu0 }
  0x99   :  { %v132_v18 = vadd.f32 %v565_v16, %v131_v17 }
  0x9b   :  { %v135_v19 = vpack.c.bf16 %v132_v18, %v132_v18 }
  0x9d   :  { %136 = vst [vmem:[#allocation2] sm:$0x1] %v135_v19 }
  0xa0   :  { %v133_v20 = vpop.f32.mrf.mxu0 }
  0xa4   :  { %v137_v21 = vld [vmem:[#allocation2] sm:$0x1] }
  0xa5   :  { %214 = vmatmul.bf16.vlgmr.msra.gmra.mxu1 %v137_v21 }
 0x122   :  { %v215_v31 = vpop.f32.mrf.mxu1 }
 0x123   :  { %v216_v32 = vadd.f32 %v566_v30, %v215_v31 }
 0x125   :  { %v219_v33 = vpack.c.bf16 %v216_v32, %v216_v32 }
 0x127   :  { %221 = vst [vmem:[#allocation2 + $0x1] sm:$0x1] %v219_v33 }
 0x12a   :  { %v217_v34 = vpop.f32.mrf.mxu1 }
 0x12e   :  { %v222_v35 = vld [vmem:[#allocation2 + $0x1] sm:$0x1] }
 0x12f   :  { %301 = vmatmul.bf16.vlgmr.msra.gmra.mxu2 %v222_v35 }
 0x1b2   :  { %v302_v40 = vpop.f32.mrf.mxu2 }
 0x1b3   :  { %v303_v41 = vadd.f32 %v567_v39, %v302_v40 }
 0x1b5   :  { %v306_v42 = vpack.c.bf16 %v303_v41, %v303_v41 }
 0x1b7   :  { %307 = vst [vmem:[#allocation2] sm:$0x1] %v306_v42 }
 0x1ba   :  { %v304_v43 = vpop.f32.mrf.mxu2 }
 0x1be   :  { %v308_v44 = vld [vmem:[#allocation2] sm:$0x1] }
 0x1bf   :  { %385 = vmatmul.bf16.vlgmr.msra.gmra.mxu3 %v308_v44 }
 0x242   :  { %v386_v46 = vpop.f32.mrf.mxu3 }
 0x243   :  { %v387_v47 = vadd.f32 %v568_v45, %v386_v46 }
 0x245   :  { %v390_v48 = vsub.f32 0.0, %v387_v47 }
 0x247   :  { %v391_v49 = vmul.f32 1.442695, %v390_v48 }
 0x249   :  { %569 = vpow2.f32 %v391_v49 }
 0x24a   :  { %v388_v50 = vpop.f32.mrf.mxu3 }
 0x24f   :  { %v570_v51 = vpop.eup %569 }
 0x250   :  { %v393_v52 = vadd.f32 1.0, %v570_v51 }
 0x252   :  { %571 = vrcp.f32 %v393_v52  ;;  %v405_v56 = vand.u32 2147483648, %v393_v52  ;;  %v403_v58 = vand.u32 2147483647, %v393_v52  ;;  %vm399_vm2 = vweird.f32 %v393_v52 }
 0x254   :  { %v406_v60 = vor.u32 1.1754944e-38, %v405_v56  ;;  %vm404_vm4 = vcmp.eq.f32.partialorder %v403_v58, 8.507059e+37 }
 0x258   :  { %v572_v53 = vpop.eup %571 }
 0x259   :  { %v395_v54 = vmul.f32 %v572_v53, %v393_v52  ;;  %vm400_vm1 = vweird.f32 %v572_v53 }
 0x25a   :  { %vm401_vm3 = vmor %vm399_vm2, %vm400_vm1 }
 0x25b   :  { %v396_v55 = vsub.f32 1.0, %v395_v54 }
 0x25d   :  { %v397_v57 = vmul.f32 %v572_v53, %v396_v55 }
 0x25f   :  { %v398_v59 = vadd.f32 %v572_v53, %v397_v57 }
 0x261   :  { %v402_v61 = vsel %vm401_vm3, %v572_v53, %v398_v59 }
 0x262   :  { %v407_v62 = vsel %vm404_vm4, %v406_v60, %v402_v61 }
 0x263   :  { %409 = vst [vmem:[#allocation12] sm:$0x3] %v407_v62 }
 0x264   :  { %420 = dma.vmem_to_hbm [thread:$0]  %s416_s29, 32, %s418_s8, [#allocation5]  }
 0x265   :  { %723 = dma.done.wait [#allocation5], 32  }
 0x266   :  { %724 = vsyncadd [#allocation5], 4294967264 }
 0x267   :  { %425 = vsyncpa [#allocation4], 1 }
 0x268   :  { %426 = vsyncpa [#allocation7], 1 }
 0x269   :  { %427 = vsyncpa [#allocation10], 1 }
 0x26a   :  { %428 = vsyncpa [#allocation5], 1 }

</bundles_post_ra>
